<compile_context>
chip_gen: v7x
topology: tpu7x:2x2x1
jax: 0.10.0
libtpu: 0.0.40
codegen_flags: <defaults>
</compile_context>

<pallas_src>
import functools

import jax
import jax.numpy as jnp
from jax import lax
from jax.experimental import pallas as pl
from jax.experimental.pallas import tpu as pltpu

_EPS = 1e-8  # torch.nn.functional.cosine_similarity default eps


def _vmem_capacity_bytes():
    """Physical VMEM per TensorCore; conservative fallback if query fails."""
    try:
        return int(pltpu.get_tpu_info().vmem_capacity_bytes)
    except Exception:
        return 64 * 1024 * 1024  # v7x has the smallest VMEM (64 MiB / TC)


def _past_align_sim_kernel(p_new, p_past, batch, block_rows, ragged, *refs):
    """One grid step = one batch tile; emits a per-block partial cosine sum.

    refs[:p_past]             : (block_rows, D)  past patches (this B-tile)
    refs[p_past:p_past+p_new] : (block_rows, D)  new patches  (this B-tile)
    refs[-1]                  : (1, 8, 128) f32  partial-sum output block
    """
    past_refs = refs[:p_past]
    new_refs = refs[p_past:p_past + p_new]
    out_ref = refs[p_past + p_new]

    inv_eps = jnp.float32(1.0 / _EPS)

    # Fused mean of the past embeddings for this tile (f32 accumulation).
    z_avg = past_refs[0][...].astype(jnp.float32)
    for r in past_refs[1:]:
        z_avg = z_avg + r[...].astype(jnp.float32)
    z_avg = z_avg * jnp.float32(1.0 / p_past)

    # Statically skipped when block_rows divides batch.  Only the last block
    # can be ragged; zeroing rows *before* the norm math keeps uninitialized
    # padded VMEM rows (possibly NaN) out of the arithmetic entirely.
    if ragged:
        row = lax.broadcasted_iota(jnp.int32, (block_rows, 1), 0)
        valid = (pl.program_id(0) * block_rows + row) < batch        # (Bt, 1)
        z_avg = jnp.where(valid, z_avg, 0.0)
    else:
        valid = None

    # torch clamp:  w12 / (max(|x|,eps) * max(|y|,eps))
    #            == w12 * min(rsqrt(|x|^2), 1/eps) * min(rsqrt(|y|^2), 1/eps)
    inv_y = jnp.minimum(
        lax.rsqrt(jnp.sum(z_avg * z_avg, axis=-1, keepdims=True)), inv_eps)

    partial = jnp.zeros((block_rows, 1), jnp.float32)
    for p in range(p_new):                                   # small, static
        x = new_refs[p][...].astype(jnp.float32)             # (Bt, D)
        if ragged:
            x = jnp.where(valid, x, 0.0)
        w12 = jnp.sum(x * z_avg, axis=-1, keepdims=True)     # (Bt, 1)
        inv_x = jnp.minimum(
            lax.rsqrt(jnp.sum(x * x, axis=-1, keepdims=True)), inv_eps)
        partial = partial + w12 * (inv_x * inv_y)

    total = jnp.sum(partial)                                 # scalar f32
    out_ref[...] = jnp.full(out_ref.shape, total, jnp.float32)


def past_align_similarity_loss(z_list_new, z_list_past, *, block_rows=None):
    """z_list_new / z_list_past: sequences of (B, D) arrays (same B, D)."""
    z_list_new = list(z_list_new)
    z_list_past = list(z_list_past)
    p_new, p_past = len(z_list_new), len(z_list_past)
    batch, dim = z_list_new[0].shape
    itemsize = max(jnp.dtype(z.dtype).itemsize
                   for z in (z_list_new + z_list_past))

    # ---- generation-aware VMEM budget & tile size ---------------------------
    # One budget drives both block_rows and vmem_limit_bytes.
    vmem_cap = _vmem_capacity_bytes()          # 64 MiB (v7x) / 128 MiB (v5e/v6e)
    vmem_limit = min(int(vmem_cap * 0.72), 80 * 1024 * 1024)
    data_budget = vmem_limit - 4 * 1024 * 1024  # headroom: out bufs, Mosaic scratch

    n_in = p_new + p_past
    # 2x: Pallas double-buffers every BlockSpec input operand.
    # +5 f32 tiles: z_avg accumulator, upcast x, and in-flight products.
    bytes_per_row = dim * (2 * n_in * itemsize + 5 * 4)

    if block_rows is None:
        block_rows = max(8, data_budget // bytes_per_row)
    block_rows = int(min(block_rows, batch))
    # Keep >= 2 grid steps whenever the batch allows it, so the "parallel"
    # axis can shard across both v7x TensorCores (harmless extra step on
    # single-TC v5e/v6e).
    if batch >= 16:
        half = -(-batch // 2)                  # ceil(batch / 2)
        half = -(-half // 8) * 8               # round up to sublane multiple
        block_rows = min(block_rows, half)
    if block_rows < batch:
        block_rows = max(8, (block_rows // 8) * 8)   # sublane multiple
    num_blocks = -(-batch // block_rows)
    ragged = (batch % block_rows) != 0

    row_spec = pl.BlockSpec((block_rows, dim), lambda i: (i, 0))
    kernel = functools.partial(_past_align_sim_kernel,
                               p_new, p_past, batch, block_rows, ragged)

    partials = pl.pallas_call(
        kernel,
        out_shape=jax.ShapeDtypeStruct((num_blocks, 8, 128), jnp.float32),
        grid=(num_blocks,),
        in_specs=[row_spec] * n_in,
        out_specs=pl.BlockSpec((1, 8, 128), lambda i: (i, 0, 0)),
        compiler_params=pltpu.CompilerParams(
            dimension_semantics=("parallel",),
            vmem_limit_bytes=vmem_limit,
        ),
    )(*z_list_past, *z_list_new)

    z_sim = jnp.sum(partials[:, 0, 0]) / (p_new * batch)
    # (-z_sim, z_sim.clone().detach()) -- detach == stop_gradient
    return -z_sim, lax.stop_gradient(z_sim)


def _reference(z_list_new, z_list_past):
    z_new = jnp.stack(list(z_list_new), 0).astype(jnp.float32)    # (P, B, D)
    z_past = jnp.stack(list(z_list_past), 0).astype(jnp.float32)  # (Q, B, D)
    z_avg = z_past.mean(0)                                        # (B, D)
    w12 = jnp.sum(z_new * z_avg[None], -1)
    x_n = jnp.maximum(jnp.sqrt(jnp.sum(z_new * z_new, -1)), _EPS)
    y_n = jnp.maximum(jnp.sqrt(jnp.sum(z_avg * z_avg, -1)), _EPS)
    z_sim = (w12 / (x_n * y_n[None])).mean()
    return -z_sim, z_sim


if __name__ == "__main__":
    key = jax.random.PRNGKey(0)
    P_NEW, P_PAST, B, D = 4, 3, 16, 256

    k1, k2 = jax.random.split(key)
    z_new_stack = jax.random.normal(k1, (P_NEW, B, D), dtype=jnp.float32)
    z_past_stack = jax.random.normal(k2, (P_PAST, B, D), dtype=jnp.float32)

    # The module takes lists of (B, D) tensors.
    z_list_new = [z_new_stack[i] for i in range(P_NEW)]
    z_list_past = [z_past_stack[i] for i in range(P_PAST)]

    neg_sim, sim_out = past_align_similarity_loss(z_list_new, z_list_past)
    jax.block_until_ready((neg_sim, sim_out))

    ref_neg, ref_sim = _reference(z_list_new, z_list_past)
    assert jnp.allclose(neg_sim, ref_neg, atol=1e-5), (neg_sim, ref_neg)
    assert jnp.allclose(sim_out, ref_sim, atol=1e-5), (sim_out, ref_sim)

    # Second case: force batch tiling with a ragged last block (masking path).
    B2 = 20
    k3, k4 = jax.random.split(k2)
    zn2 = jax.random.normal(k3, (P_NEW, B2, D), dtype=jnp.float32)
    zp2 = jax.random.normal(k4, (P_PAST, B2, D), dtype=jnp.float32)
    ln2 = [zn2[i] for i in range(P_NEW)]
    lp2 = [zp2[i] for i in range(P_PAST)]

    neg2, sim2 = past_align_similarity_loss(ln2, lp2, block_rows=8)
    jax.block_until_ready((neg2, sim2))
    rneg2, rsim2 = _reference(ln2, lp2)
    assert jnp.allclose(neg2, rneg2, atol=1e-5), (neg2, rneg2)
    assert jnp.allclose(sim2, rsim2, atol=1e-5), (sim2, rsim2)

    print("KERNEL_OK")
</pallas_src>

<mosaic_0001>
module attributes {stable_mosaic.version = 11 : i64} {
  func.func @_past_align_sim_kernel(%arg0: i32, %arg1: memref<8x256xf32, #tpu.memory_space<vmem>>, %arg2: memref<8x256xf32, #tpu.memory_space<vmem>>, %arg3: memref<8x256xf32, #tpu.memory_space<vmem>>, %arg4: memref<8x256xf32, #tpu.memory_space<vmem>>, %arg5: memref<8x256xf32, #tpu.memory_space<vmem>>, %arg6: memref<8x256xf32, #tpu.memory_space<vmem>>, %arg7: memref<8x256xf32, #tpu.memory_space<vmem>>, %arg8: memref<1x8x128xf32, #tpu.memory_space<vmem>>) attributes {dimension_semantics = [#tpu.dimension_semantics<parallel>], iteration_bounds = array<i64: 2>, scalar_prefetch = 0 : i64, scratch_operands = 0 : i64, tpu.core_type = #tpu.core_type<tc>, window_params = [{transform_indices = @transform_0, window_bounds = array<i64: 8, 256>}, {transform_indices = @transform_1, window_bounds = array<i64: 8, 256>}, {transform_indices = @transform_2, window_bounds = array<i64: 8, 256>}, {transform_indices = @transform_3, window_bounds = array<i64: 8, 256>}, {transform_indices = @transform_4, window_bounds = array<i64: 8, 256>}, {transform_indices = @transform_5, window_bounds = array<i64: 8, 256>}, {transform_indices = @transform_6, window_bounds = array<i64: 8, 256>}, {transform_indices = @transform_7, window_bounds = array<i64: 1, 8, 128>}]} {
    %c0 = arith.constant 0 : index
    %c0_0 = arith.constant 0 : index
    %0 = vector.load %arg1[%c0, %c0_0] : memref<8x256xf32, #tpu.memory_space<vmem>>, vector<8x256xf32>
    %c0_1 = arith.constant 0 : index
    %c0_2 = arith.constant 0 : index
    %1 = vector.load %arg2[%c0_1, %c0_2] : memref<8x256xf32, #tpu.memory_space<vmem>>, vector<8x256xf32>
    %2 = arith.addf %0, %1 : vector<8x256xf32>
    %c0_3 = arith.constant 0 : index
    %c0_4 = arith.constant 0 : index
    %3 = vector.load %arg3[%c0_3, %c0_4] : memref<8x256xf32, #tpu.memory_space<vmem>>, vector<8x256xf32>
    %4 = arith.addf %2, %3 : vector<8x256xf32>
    %cst = arith.constant 0.333333343 : f32
    %5 = vector.broadcast %cst : f32 to vector<8x256xf32>
    %6 = arith.mulf %4, %5 : vector<8x256xf32>
    %7 = arith.mulf %6, %6 : vector<8x256xf32>
    %cst_5 = arith.constant dense<0.000000e+00> : vector<8xf32>
    %8 = vector.multi_reduction <add>, %7, %cst_5 [1] : vector<8x256xf32> to vector<8xf32>
    %9 = vector.shape_cast %8 : vector<8xf32> to vector<8x1xf32>
    %10 = math.rsqrt %9 : vector<8x1xf32>
    %cst_6 = arith.constant 1.000000e+08 : f32
    %11 = vector.broadcast %cst_6 : f32 to vector<8x1xf32>
    %12 = arith.minimumf %10, %11 : vector<8x1xf32>
    %cst_7 = arith.constant 0.000000e+00 : f32
    %13 = vector.broadcast %cst_7 : f32 to vector<8x1xf32>
    %c0_8 = arith.constant 0 : index
    %c0_9 = arith.constant 0 : index
    %14 = vector.load %arg4[%c0_8, %c0_9] : memref<8x256xf32, #tpu.memory_space<vmem>>, vector<8x256xf32>
    %15 = arith.mulf %14, %6 : vector<8x256xf32>
    %cst_10 = arith.constant dense<0.000000e+00> : vector<8xf32>
    %16 = vector.multi_reduction <add>, %15, %cst_10 [1] : vector<8x256xf32> to vector<8xf32>
    %17 = vector.shape_cast %16 : vector<8xf32> to vector<8x1xf32>
    %18 = arith.mulf %14, %14 : vector<8x256xf32>
    %cst_11 = arith.constant dense<0.000000e+00> : vector<8xf32>
    %19 = vector.multi_reduction <add>, %18, %cst_11 [1] : vector<8x256xf32> to vector<8xf32>
    %20 = vector.shape_cast %19 : vector<8xf32> to vector<8x1xf32>
    %21 = math.rsqrt %20 : vector<8x1xf32>
    %cst_12 = arith.constant 1.000000e+08 : f32
    %22 = vector.broadcast %cst_12 : f32 to vector<8x1xf32>
    %23 = arith.minimumf %21, %22 : vector<8x1xf32>
    %24 = arith.mulf %23, %12 : vector<8x1xf32>
    %25 = arith.mulf %17, %24 : vector<8x1xf32>
    %26 = arith.addf %13, %25 : vector<8x1xf32>
    %c0_13 = arith.constant 0 : index
    %c0_14 = arith.constant 0 : index
    %27 = vector.load %arg5[%c0_13, %c0_14] : memref<8x256xf32, #tpu.memory_space<vmem>>, vector<8x256xf32>
    %28 = arith.mulf %27, %6 : vector<8x256xf32>
    %cst_15 = arith.constant dense<0.000000e+00> : vector<8xf32>
    %29 = vector.multi_reduction <add>, %28, %cst_15 [1] : vector<8x256xf32> to vector<8xf32>
    %30 = vector.shape_cast %29 : vector<8xf32> to vector<8x1xf32>
    %31 = arith.mulf %27, %27 : vector<8x256xf32>
    %cst_16 = arith.constant dense<0.000000e+00> : vector<8xf32>
    %32 = vector.multi_reduction <add>, %31, %cst_16 [1] : vector<8x256xf32> to vector<8xf32>
    %33 = vector.shape_cast %32 : vector<8xf32> to vector<8x1xf32>
    %34 = math.rsqrt %33 : vector<8x1xf32>
    %cst_17 = arith.constant 1.000000e+08 : f32
    %35 = vector.broadcast %cst_17 : f32 to vector<8x1xf32>
    %36 = arith.minimumf %34, %35 : vector<8x1xf32>
    %37 = arith.mulf %36, %12 : vector<8x1xf32>
    %38 = arith.mulf %30, %37 : vector<8x1xf32>
    %39 = arith.addf %26, %38 : vector<8x1xf32>
    %c0_18 = arith.constant 0 : index
    %c0_19 = arith.constant 0 : index
    %40 = vector.load %arg6[%c0_18, %c0_19] : memref<8x256xf32, #tpu.memory_space<vmem>>, vector<8x256xf32>
    %41 = arith.mulf %40, %6 : vector<8x256xf32>
    %cst_20 = arith.constant dense<0.000000e+00> : vector<8xf32>
    %42 = vector.multi_reduction <add>, %41, %cst_20 [1] : vector<8x256xf32> to vector<8xf32>
    %43 = vector.shape_cast %42 : vector<8xf32> to vector<8x1xf32>
    %44 = arith.mulf %40, %40 : vector<8x256xf32>
    %cst_21 = arith.constant dense<0.000000e+00> : vector<8xf32>
    %45 = vector.multi_reduction <add>, %44, %cst_21 [1] : vector<8x256xf32> to vector<8xf32>
    %46 = vector.shape_cast %45 : vector<8xf32> to vector<8x1xf32>
    %47 = math.rsqrt %46 : vector<8x1xf32>
    %cst_22 = arith.constant 1.000000e+08 : f32
    %48 = vector.broadcast %cst_22 : f32 to vector<8x1xf32>
    %49 = arith.minimumf %47, %48 : vector<8x1xf32>
    %50 = arith.mulf %49, %12 : vector<8x1xf32>
    %51 = arith.mulf %43, %50 : vector<8x1xf32>
    %52 = arith.addf %39, %51 : vector<8x1xf32>
    %c0_23 = arith.constant 0 : index
    %c0_24 = arith.constant 0 : index
    %53 = vector.load %arg7[%c0_23, %c0_24] : memref<8x256xf32, #tpu.memory_space<vmem>>, vector<8x256xf32>
    %54 = arith.mulf %53, %6 : vector<8x256xf32>
    %cst_25 = arith.constant dense<0.000000e+00> : vector<8xf32>
    %55 = vector.multi_reduction <add>, %54, %cst_25 [1] : vector<8x256xf32> to vector<8xf32>
    %56 = vector.shape_cast %55 : vector<8xf32> to vector<8x1xf32>
    %57 = arith.mulf %53, %53 : vector<8x256xf32>
    %cst_26 = arith.constant dense<0.000000e+00> : vector<8xf32>
    %58 = vector.multi_reduction <add>, %57, %cst_26 [1] : vector<8x256xf32> to vector<8xf32>
    %59 = vector.shape_cast %58 : vector<8xf32> to vector<8x1xf32>
    %60 = math.rsqrt %59 : vector<8x1xf32>
    %cst_27 = arith.constant 1.000000e+08 : f32
    %61 = vector.broadcast %cst_27 : f32 to vector<8x1xf32>
    %62 = arith.minimumf %60, %61 : vector<8x1xf32>
    %63 = arith.mulf %62, %12 : vector<8x1xf32>
    %64 = arith.mulf %56, %63 : vector<8x1xf32>
    %65 = arith.addf %52, %64 : vector<8x1xf32>
    %66 = vector.shape_cast %65 : vector<8x1xf32> to vector<1x8x1xf32>
    %cst_28 = arith.constant dense<0.000000e+00> : vector<1xf32>
    %67 = vector.multi_reduction <add>, %66, %cst_28 [1, 2] : vector<1x8x1xf32> to vector<1xf32>
    %68 = vector.shape_cast %67 : vector<1xf32> to vector<1x1x1xf32>
    %69 = vector.extract %68[0, 0, 0] : f32 from vector<1x1x1xf32>
    %70 = vector.broadcast %69 : f32 to vector<1x8x128xf32>
    %c0_29 = arith.constant 0 : index
    %c0_30 = arith.constant 0 : index
    %c0_31 = arith.constant 0 : index
    %71 = vector.load %arg8[%c0_29, %c0_30, %c0_31] : memref<1x8x128xf32, #tpu.memory_space<vmem>>, vector<1x8x128xf32>
    tpu.vector_store %arg8[%c0_29, %c0_30, %c0_31], %70 {strides = array<i32>} : memref<1x8x128xf32, #tpu.memory_space<vmem>>, vector<1x8x128xf32>,
    return
  }
  func.func @transform_0(%arg0: i32) -> (i32, i32) {
    %c0_i32 = arith.constant 0 : i32
    %c0_i32_0 = arith.constant 0 : i32
    return %arg0, %c0_i32 : i32, i32
  }
  func.func @transform_1(%arg0: i32) -> (i32, i32) {
    %c0_i32 = arith.constant 0 : i32
    %c0_i32_0 = arith.constant 0 : i32
    return %arg0, %c0_i32 : i32, i32
  }
  func.func @transform_2(%arg0: i32) -> (i32, i32) {
    %c0_i32 = arith.constant 0 : i32
    %c0_i32_0 = arith.constant 0 : i32
    return %arg0, %c0_i32 : i32, i32
  }
  func.func @transform_3(%arg0: i32) -> (i32, i32) {
    %c0_i32 = arith.constant 0 : i32
    %c0_i32_0 = arith.constant 0 : i32
    return %arg0, %c0_i32 : i32, i32
  }
  func.func @transform_4(%arg0: i32) -> (i32, i32) {
    %c0_i32 = arith.constant 0 : i32
    %c0_i32_0 = arith.constant 0 : i32
    return %arg0, %c0_i32 : i32, i32
  }
  func.func @transform_5(%arg0: i32) -> (i32, i32) {
    %c0_i32 = arith.constant 0 : i32
    %c0_i32_0 = arith.constant 0 : i32
    return %arg0, %c0_i32 : i32, i32
  }
  func.func @transform_6(%arg0: i32) -> (i32, i32) {
    %c0_i32 = arith.constant 0 : i32
    %c0_i32_0 = arith.constant 0 : i32
    return %arg0, %c0_i32 : i32, i32
  }
  func.func @transform_7(%arg0: i32) -> (i32, i32, i32) {
    %c0_i32 = arith.constant 0 : i32
    %c0_i32_0 = arith.constant 0 : i32
    %c0_i32_1 = arith.constant 0 : i32
    return %arg0, %c0_i32, %c0_i32_0 : i32, i32, i32
  }
}

</mosaic_0001>

<bundles_post_ra>
// kernel: tpu_custom_call.1
= control target key start
LH: loop header
LB: loop body
LE: loop exit
PB: predicated region body
PF: predicated region fallthrough
CT: control target
= control target key end

     0   :  { %s1657_s0 = inlined_call_operand.hbm [shape: f32[16,256], index: 0, kind: input, shape index: {}]   ;;  %s1658_s1 = inlined_call_operand.hbm [shape: f32[16,256], index: 1, kind: input, shape index: {}]   ;;  %s1659_s2 = inlined_call_operand.hbm [shape: f32[16,256], index: 2, kind: input, shape index: {}]   ;;  %s1660_s3 = inlined_call_operand.hbm [shape: f32[16,256], index: 3, kind: input, shape index: {}]   ;;  %s1661_s4 = inlined_call_operand.hbm [shape: f32[16,256], index: 4, kind: input, shape index: {}]   ;;  %s1662_s5 = inlined_call_operand.hbm [shape: f32[16,256], index: 5, kind: input, shape index: {}]   ;;  %s1663_s6 = inlined_call_operand.hbm [shape: f32[16,256], index: 6, kind: input, shape index: {}]   ;;  %s1664_s7 = inlined_call_operand.hbm [shape: f32[2,8,128], index: 7, kind: output, shape index: {}]  }
   0x1   :  { %1673 = sst [smem:[#allocation23_spill]] %s1658_s1 }
   0x2   :  { %1674 = sst [smem:[#allocation24_spill]] %s1660_s3 }
   0x3   :  { %12 = vsyncpa [#allocation3], 0 }
   0x4   :  { %14 = vsyncpa [#allocation3 + $0x1], 0 }
   0x5   :  { %15 = vsyncpa [#allocation6], 0 }
   0x6   :  { %17 = vsyncpa [#allocation6 + $0x1], 0 }
   0x7   :  { %18 = vsyncpa [#allocation9], 0 }
   0x8   :  { %20 = vsyncpa [#allocation9 + $0x1], 0 }
   0x9   :  { %21 = vsyncpa [#allocation12], 0 }
   0xa   :  { %23 = vsyncpa [#allocation12 + $0x1], 0 }
   0xb   :  { %24 = vsyncpa [#allocation4], 0 }
   0xc   :  { %26 = vsyncpa [#allocation4 + $0x1], 0  ;;  %s1297_s24 = smov 0   ;;  %s1299_s25 = smov 0  }
   0xd   :  { %s1301_s26 = smov 0   ;;  %s1303_s27 = smov 0  }
   0xe LB: > { %1675 = sst [smem:[#allocation20_spill]] %s1247_s27  ;;  %s1318_s28 = sadd.s32 4294967295, %s1247_s27   ;;  %s1247_s27 = sphi %s1303_s27, %s1706_s27   ;;  %s1243_s26 = sphi %s1301_s26, %s1710_s26   ;;  %s1239_s25 = sphi %s1299_s25, %s1709_s25   ;;  %s1235_s24 = sphi %s1297_s24, %s1708_s24  }
   0xf   : > { %s827_s29 = sadd.s32 4294967294, %s1247_s27   ;;  %s1322_s30 = sadd.s32 1, %s1247_s27  }
  0x10   : > { %1676 = sst [smem:[#allocation21_spill]] %s1322_s30  ;;  %s39_s8 = sadd.s32 1, %s1243_s26 }
  0x11   : > { %s36_s9 = ssub.s32 %s1247_s27, %s1322_s30  ;;  %p46_p0 = scmp.ne.s32.totalorder %s1243_s26, %s1239_s25 }
  0x12   : > { %p37_p1 = scmp.eq.s32.totalorder %s36_s9, 0  ;;  %p47_p2 = scmp.eq.s32.totalorder %s1247_s27, 0 }
  0x13   : > { %p52_p3 = scmp.ne.s32.totalorder %s1239_s25, %s1235_s24  ;;  %p53_p4 = scmp.eq.s32.totalorder %s1318_s28, 0 }
  0x14   : > { %s1334_s10 = scalar_select %p37_p1, %s1243_s26, %s39_s8  }
  0x15   : > { %p48_p5 = por %p47_p2, %p46_p0  ;;  %p1336_p6 = por %p53_p4, %p52_p3 }
  0x16   : > { %1677 = sst [smem:[#allocation22_spill]] %s1334_s10  ;;  %p232_p7 = scmp.eq.s32.totalorder %s1318_s28, 1 }
  0x17   : > { %s1678_s11 = scalar_select %p1336_p6, 1, 0 }
  0x18   : > { %p238_p8 = scmp.eq.s32.totalorder %s827_s29, 1  ;;  %p915_p10 = scmp.lt.s32.totalorder %s1247_s27, 2 }
  0x19   : > { %p1343_p11 = por %p232_p7, %p46_p0  ;;  %s1665_s14 = sand.u32 1, %s1243_s26  }
  0x1a   : > { %p1347_p12 = por %p238_p8, %p52_p3  ;;  %s1353_s15 = sshll.u32 %s1247_s27, 8 }
  0x1b   : > { %s1679_s12 = scalar_select %p1343_p11, 1, 0 }
  0x1c   : > { %s1680_s13 = scalar_select %p1347_p12, 1, 0 }
  0x1d   : > { %s1357_s16 = sshll.u32 %s1665_s14, 4  ;;  %p1359_p13 = pnand %p915_p10, %p48_p5 }
  0x1e   : > { %s1364_s18 = sand.u32 1, %s1247_s27   ;;  %s1682_s1 = sld [smem:[#allocation23_spill]] }
  0x1f   : > { %s1681_s17 = scalar_select %p1359_p13, 1, 0 }
  0x20   : > { %s281_s22 = scalar_lea.vmem [#allocation5], %s1357_s16  ;;  %p1381_p2 = pneg %p1359_p13 }
  0x21   : > { %s289_s23 = sshll.u32 %s281_s22, 4  ;;  %s1373_s23 = int_to_ptr.vmem [resolvable:$true] %s289_s23 }
  0x24   : > { %s1370_s21 = scalar_lea.hbm %s1682_s1, %s1353_s15  ;;  %s964_s14 = scalar_lea.hbm %s1682_s1, 512 }
  0x25   : > { %s959_s8 = scalar_lea.hbm %s1370_s21, 256  ;;  %p965_p5 = scmp.lt.u32.totalorder %s1370_s21, %s1682_s1 }
  0x26   : > { %p960_p1 = scmp.ne.s32.totalorder %s1370_s21, %s959_s8  ;;  %p966_p7 = scmp.lt.u32.totalorder %s964_s14, %s959_s8 }
  0x27   : > { %p968_p10 = scmp.lt.u32.totalorder %s959_s8, %s1370_s21 }
  0x28   : > { %p962_p3 = pnand %p1381_p2, %p960_p1  ;;  %p967_p8 = por %p966_p7, %p965_p5 }
  0x2a   : > { %p963_p4 = pneg %p962_p3  ;;  %p969_p9 = por %p968_p10, %p967_p8 }
  0x2c   : > { %p970_p0 = pnand %p969_p9, %p963_p4 }
  0x2e   : > { %973 = shalt.err (!%p970_p0)
}
  0x2f   : > { %s974_s29 = scalar_lea.vmem %s1373_s23, 256  ;;  %s1249_s19 = smov [#allocation5]  }
  0x30   : > { %p975_p1 = scmp.ne.s32.totalorder %s1373_s23, %s974_s29  ;;  %s979_s20 = sshll.u32 %s1249_s19, 4  ;;  %s980_s20 = int_to_ptr.vmem [resolvable:$false] %s979_s20 }
  0x31   : > { %s981_s10 = scalar_lea.vmem %s980_s20, 512  ;;  %p982_p11 = scmp.lt.s32.totalorder %s1373_s23, %s980_s20 }
  0x32   : > { %p977_p3 = pnand %p975_p1, %p1381_p2  ;;  %p983_p6 = scmp.lt.s32.totalorder %s981_s10, %s974_s29 }
  0x34   : > { %p978_p12 = pneg %p977_p3  ;;  %p984_p5 = por %p983_p6, %p982_p11 }
  0x36   : > { %p985_p7 = pnand %p984_p5, %p978_p12 }
  0x38   : > { %988 = shalt.err (!%p985_p7)
}
  0x39   : > { %s1684_s14 = scalar_lea.sflag [#allocation6], %s1364_s18  ;;  %p389_p9 = scmp.lt.s32.totalorder %s1247_s27, 3 }
  0x3a   : > { %895 = dma.hbm_to_vmem [thread:$0]  (!%p1359_p13), %s1370_s21, 256, %s1373_s23, %s1684_s14  }
  0x3b   : > { %s1685_s3 = sld [smem:[#allocation24_spill]]  ;;  %p1686_p6 = scmp.ge.s32.totalorder %s1247_s27, 1 }
  0x3c   : > { %s319_s20 = scalar_lea.vmem [#allocation8], %s1357_s16 }
  0x3d   : > { %p1415_p11 = pnand %p1686_p6, %p389_p9  ;;  %s327_s10 = sshll.u32 %s319_s20, 4  ;;  %s328_s10 = int_to_ptr.vmem [resolvable:$true] %s327_s10 }
  0x3f   : > { %s1687_s19 = scalar_select %p1415_p11, 1, 0 }
  0x41   : > { %s1411_s29 = scalar_lea.hbm %s1685_s3, %s1353_s15  ;;  %s994_s8 = scalar_lea.hbm %s1685_s3, 512 }
  0x42   : > { %s989_s21 = scalar_lea.hbm %s1411_s29, 256  ;;  %p995_p8 = scmp.lt.u32.totalorder %s1411_s29, %s1685_s3 }
  0x43   : > { %p990_p12 = scmp.ne.s32.totalorder %s1411_s29, %s989_s21  ;;  %p996_p10 = scmp.lt.u32.totalorder %s994_s8, %s989_s21 }
  0x44   : > { %p998_p3 = scmp.lt.u32.totalorder %s989_s21, %s1411_s29 }
  0x45   : > { %p992_p0 = pnand %p990_p12, %p1381_p2  ;;  %p997_p1 = por %p996_p10, %p995_p8 }
  0x47   : > { %p993_p4 = pneg %p992_p0  ;;  %p999_p5 = por %p998_p3, %p997_p1 }
  0x49   : > { %p1000_p7 = pnand %p999_p5, %p993_p4 }
  0x4b   : > { %1003 = shalt.err (!%p1000_p7)
}
  0x4c   : > { %s1004_s20 = scalar_lea.vmem %s328_s10, 256  ;;  %s1250_s1 = smov [#allocation8]  }
  0x4d   : > { %p1005_p9 = scmp.ne.s32.totalorder %s328_s10, %s1004_s20  ;;  %s1009_s27 = sshll.u32 %s1250_s1, 4  ;;  %s1010_s27 = int_to_ptr.vmem [resolvable:$false] %s1009_s27 }
  0x4e   : > { %s1011_s23 = scalar_lea.vmem %s1010_s27, 512  ;;  %p1012_p0 = scmp.lt.s32.totalorder %s328_s10, %s1010_s27 }
  0x4f   : > { %p1007_p6 = pnand %p1005_p9, %p1381_p2  ;;  %p1013_p11 = scmp.lt.s32.totalorder %s1011_s23, %s1004_s20 }
  0x51   : > { %p1008_p12 = pneg %p1007_p6  ;;  %p1014_p13 = por %p1013_p11, %p1012_p0 }
  0x53   : > { %p1015_p8 = pnand %p1014_p13, %p1008_p12 }
  0x55   : > { %1018 = shalt.err (!%p1015_p8)
}
  0x56   : > { %p1688_p10 = scmp.ne.s32.totalorder %s1681_s17, 0  ;;  %s1689_s30 = scalar_lea.sflag [#allocation9], %s1364_s18 }
  0x57   : > { %s1444_s1 = scalar_lea.hbm %s1662_s5, %s1353_s15  ;;  %s357_s27 = scalar_lea.vmem [#allocation11], %s1357_s16 }
  0x58   : > { %901 = dma.hbm_to_vmem [thread:$0]  (!%p1688_p10), %s1411_s29, 256, %s328_s10, %s1689_s30  }
  0x59   : > { %s365_s8 = sshll.u32 %s357_s27, 4  ;;  %s1019_s20 = scalar_lea.hbm %s1444_s1, 256  ;;  %s366_s8 = int_to_ptr.vmem [resolvable:$true] %s365_s8 }
  0x5a   : > { %p1020_p13 = scmp.ne.s32.totalorder %s1444_s1, %s1019_s20  ;;  %s1024_s10 = scalar_lea.hbm %s1662_s5, 512 }
  0x5b   : > { %p1025_p1 = scmp.lt.u32.totalorder %s1444_s1, %s1662_s5  ;;  %p1026_p3 = scmp.lt.u32.totalorder %s1024_s10, %s1019_s20 }
  0x5c   : > { %p1022_p11 = pnand %p1020_p13, %p1381_p2  ;;  %p1028_p7 = scmp.lt.u32.totalorder %s1019_s20, %s1444_s1 }
  0x5d   : > { %p1027_p5 = por %p1026_p3, %p1025_p1 }
  0x5e   : > { %p1023_p4 = pneg %p1022_p11 }
  0x5f   : > { %p1029_p9 = por %p1028_p7, %p1027_p5 }
  0x61   : > { %p1030_p6 = pnand %p1029_p9, %p1023_p4 }
  0x63   : > { %1033 = shalt.err (!%p1030_p6)
}
  0x64   : > { %s1034_s14 = scalar_lea.vmem %s366_s8, 256  ;;  %s1251_s27 = smov [#allocation11]  }
  0x65   : > { %p1035_p12 = scmp.ne.s32.totalorder %s366_s8, %s1034_s14  ;;  %s1039_s22 = sshll.u32 %s1251_s27, 4  ;;  %s1040_s22 = int_to_ptr.vmem [resolvable:$false] %s1039_s22 }
  0x66   : > { %s1041_s23 = scalar_lea.vmem %s1040_s22, 512  ;;  %p1042_p13 = scmp.lt.s32.totalorder %s366_s8, %s1040_s22 }
  0x67   : > { %p1037_p0 = pnand %p1035_p12, %p1381_p2  ;;  %p1043_p11 = scmp.lt.s32.totalorder %s1041_s23, %s1034_s14 }
  0x69   : > { %p1038_p8 = pneg %p1037_p0  ;;  %p1044_p10 = por %p1043_p11, %p1042_p13 }
  0x6b   : > { %p1045_p1 = pnand %p1044_p10, %p1038_p8 }
  0x6d   : > { %1048 = shalt.err (!%p1045_p1)
}
  0x6e   : > { %p1690_p3 = scmp.ne.s32.totalorder %s1681_s17, 0  ;;  %s1691_s20 = scalar_lea.sflag [#allocation12], %s1364_s18 }
  0x6f   : > { %s1471_s30 = scalar_lea.hbm %s1657_s0, %s1353_s15  ;;  %s262_s22 = scalar_lea.vmem [#allocation2], %s1357_s16 }
  0x70   : > { %907 = dma.hbm_to_vmem [thread:$0]  (!%p1690_p3), %s1444_s1, 256, %s366_s8, %s1691_s20  }
  0x71   : > { %s270_s21 = sshll.u32 %s262_s22, 4  ;;  %s1692_s14 = sand.u32 1, %s1243_s26   ;;  %s271_s21 = int_to_ptr.vmem [resolvable:$true] %s270_s21 }
  0x72   : > { %s259_s27 = scalar_lea.sflag [#allocation3], %s1692_s14  ;;  %s1049_s23 = scalar_lea.hbm %s1471_s30, 256 }
  0x73   : > { %p1050_p10 = scmp.ne.s32.totalorder %s1471_s30, %s1049_s23  ;;  %s1054_s20 = scalar_lea.hbm %s1657_s0, 512 }
  0x74   : > { %p1055_p7 = scmp.lt.u32.totalorder %s1471_s30, %s1657_s0  ;;  %p1056_p9 = scmp.lt.u32.totalorder %s1054_s20, %s1049_s23 }
  0x75   : > { %p1052_p4 = pnand %p1050_p10, %p1381_p2  ;;  %p1058_p12 = scmp.lt.u32.totalorder %s1049_s23, %s1471_s30 }
  0x76   : > { %p1057_p6 = por %p1056_p9, %p1055_p7 }
  0x77   : > { %p1053_p5 = pneg %p1052_p4 }
  0x78   : > { %p1059_p0 = por %p1058_p12, %p1057_p6 }
  0x7a   : > { %p1060_p8 = pnand %p1059_p0, %p1053_p5 }
  0x7c   : > { %1063 = shalt.err (!%p1060_p8)
}
  0x7d   : > { %s1064_s22 = scalar_lea.vmem %s271_s21, 256  ;;  %s1252_s14 = smov [#allocation2]  }
  0x7e   : > { %p1065_p13 = scmp.ne.s32.totalorder %s271_s21, %s1064_s22  ;;  %s1069_s3 = sshll.u32 %s1252_s14, 4  ;;  %s1070_s3 = int_to_ptr.vmem [resolvable:$false] %s1069_s3 }
  0x7f   : > { %s1071_s1 = scalar_lea.vmem %s1070_s3, 512  ;;  %p1072_p10 = scmp.lt.s32.totalorder %s271_s21, %s1070_s3 }
  0x80   : > { %p1067_p11 = pnand %p1065_p13, %p1381_p2  ;;  %p1073_p4 = scmp.lt.s32.totalorder %s1071_s1, %s1064_s22 }
  0x82   : > { %p1068_p1 = pneg %p1067_p11  ;;  %p1074_p3 = por %p1073_p4, %p1072_p10 }
  0x84   : > { %p1075_p7 = pnand %p1074_p3, %p1068_p1 }
  0x86   : > { %1078 = shalt.err (!%p1075_p7)
}
  0x87   : > { %p1693_p9 = scmp.ne.s32.totalorder %s1681_s17, 0  ;;  %s1497_s20 = scalar_lea.hbm %s1659_s2, %s1353_s15 }
  0x88   : > { %s300_s3 = scalar_lea.vmem [#allocation7], %s1357_s16  ;;  %s1079_s10 = scalar_lea.hbm %s1497_s20, 256 }
  0x89   : > { %892 = dma.hbm_to_vmem [thread:$0]  (!%p1693_p9), %s1471_s30, 256, %s271_s21, %s259_s27  }
  0x8a   : > { %s308_s29 = sshll.u32 %s300_s3, 4  ;;  %p1080_p3 = scmp.ne.s32.totalorder %s1497_s20, %s1079_s10  ;;  %s309_s29 = int_to_ptr.vmem [resolvable:$true] %s308_s29 }
  0x8b   : > { %s1084_s30 = scalar_lea.hbm %s1659_s2, 512  ;;  %p1085_p12 = scmp.lt.u32.totalorder %s1497_s20, %s1659_s2 }
  0x8c   : > { %p1082_p5 = pnand %p1080_p3, %p1381_p2  ;;  %p1086_p0 = scmp.lt.u32.totalorder %s1084_s30, %s1079_s10 }
  0x8d   : > { %p1088_p13 = scmp.lt.u32.totalorder %s1079_s10, %s1497_s20 }
  0x8e   : > { %p1083_p6 = pneg %p1082_p5  ;;  %p1087_p8 = por %p1086_p0, %p1085_p12 }
  0x90   : > { %p1089_p11 = por %p1088_p13, %p1087_p8 }
  0x92   : > { %p1090_p1 = pnand %p1089_p11, %p1083_p6 }
  0x94   : > { %1093 = shalt.err (!%p1090_p1)
}
  0x95   : > { %s1094_s1 = scalar_lea.vmem %s309_s29, 256  ;;  %s1253_s23 = smov [#allocation7]  }
  0x96   : > { %p1095_p10 = scmp.ne.s32.totalorder %s309_s29, %s1094_s1  ;;  %s1099_s8 = sshll.u32 %s1253_s23, 4  ;;  %s1100_s8 = int_to_ptr.vmem [resolvable:$false] %s1099_s8 }
  0x97   : > { %s1101_s3 = scalar_lea.vmem %s1100_s8, 512  ;;  %p1102_p3 = scmp.lt.s32.totalorder %s309_s29, %s1100_s8 }
  0x98   : > { %p1097_p4 = pnand %p1095_p10, %p1381_p2  ;;  %p1103_p5 = scmp.lt.s32.totalorder %s1101_s3, %s1094_s1 }
  0x9a   : > { %p1098_p7 = pneg %p1097_p4  ;;  %p1104_p9 = por %p1103_p5, %p1102_p3 }
  0x9c   : > { %p1105_p0 = pnand %p1104_p9, %p1098_p7 }
  0x9e   : > { %1108 = shalt.err (!%p1105_p0)
}
  0x9f   : > { %p1694_p12 = scmp.ne.s32.totalorder %s1681_s17, 0  ;;  %s1695_s10 = scalar_lea.sflag [#allocation6], %s1364_s18 }
  0xa0   : > { %s1523_s30 = scalar_lea.hbm %s1661_s4, %s1353_s15  ;;  %s338_s21 = scalar_lea.vmem [#allocation10], %s1357_s16 }
  0xa1   : > { %898 = dma.hbm_to_vmem [thread:$0]  (!%p1694_p12), %s1497_s20, 256, %s309_s29, %s1695_s10  }
  0xa2   : > { %s346_s27 = sshll.u32 %s338_s21, 4  ;;  %s1109_s1 = scalar_lea.hbm %s1523_s30, 256  ;;  %s347_s27 = int_to_ptr.vmem [resolvable:$true] %s346_s27 }
  0xa3   : > { %p1110_p9 = scmp.ne.s32.totalorder %s1523_s30, %s1109_s1  ;;  %s1114_s20 = scalar_lea.hbm %s1661_s4, 512 }
  0xa4   : > { %p1115_p13 = scmp.lt.u32.totalorder %s1523_s30, %s1661_s4  ;;  %p1116_p11 = scmp.lt.u32.totalorder %s1114_s20, %s1109_s1 }
  0xa5   : > { %p1112_p6 = pnand %p1110_p9, %p1381_p2  ;;  %p1118_p10 = scmp.lt.u32.totalorder %s1109_s1, %s1523_s30 }
  0xa6   : > { %p1117_p1 = por %p1116_p11, %p1115_p13 }
  0xa7   : > { %p1113_p8 = pneg %p1112_p6 }
  0xa8   : > { %p1119_p4 = por %p1118_p10, %p1117_p1 }
  0xaa   : > { %p1120_p7 = pnand %p1119_p4, %p1113_p8 }
  0xac   : > { %1123 = shalt.err (!%p1120_p7)
}
  0xad   : > { %s1124_s10 = scalar_lea.vmem %s347_s27, 256  ;;  %s1254_s22 = smov [#allocation10]  }
  0xae   : > { %p1125_p3 = scmp.ne.s32.totalorder %s347_s27, %s1124_s10  ;;  %s1129_s14 = sshll.u32 %s1254_s22, 4  ;;  %s1130_s14 = int_to_ptr.vmem [resolvable:$false] %s1129_s14 }
  0xaf   : > { %s1131_s21 = scalar_lea.vmem %s1130_s14, 512  ;;  %p1132_p9 = scmp.lt.s32.totalorder %s347_s27, %s1130_s14 }
  0xb0   : > { %p1127_p5 = pnand %p1125_p3, %p1381_p2  ;;  %p1133_p6 = scmp.lt.s32.totalorder %s1131_s21, %s1124_s10 }
  0xb2   : > { %p1128_p0 = pneg %p1127_p5  ;;  %p1134_p12 = por %p1133_p6, %p1132_p9 }
  0xb4   : > { %p1135_p11 = pnand %p1134_p12, %p1128_p0 }
  0xb6   : > { %1138 = shalt.err (!%p1135_p11)
}
  0xb7   : > { %p1696_p13 = scmp.ne.s32.totalorder %s1681_s17, 0  ;;  %s1697_s1 = scalar_lea.sflag [#allocation9], %s1364_s18 }
  0xb8   : > { %s1549_s20 = scalar_lea.hbm %s1663_s6, %s1353_s15  ;;  %s376_s29 = scalar_lea.vmem [#allocation13], %s1357_s16 }
  0xb9   : > { %904 = dma.hbm_to_vmem [thread:$0]  (!%p1696_p13), %s1523_s30, 256, %s347_s27, %s1697_s1  }
  0xba   : > { %s384_s3 = sshll.u32 %s376_s29, 4  ;;  %s1139_s10 = scalar_lea.hbm %s1549_s20, 256  ;;  %s385_s3 = int_to_ptr.vmem [resolvable:$true] %s384_s3 }
  0xbb   : > { %p1140_p12 = scmp.ne.s32.totalorder %s1549_s20, %s1139_s10  ;;  %s1144_s30 = scalar_lea.hbm %s1663_s6, 512 }
  0xbc   : > { %p1145_p10 = scmp.lt.u32.totalorder %s1549_s20, %s1663_s6  ;;  %p1146_p4 = scmp.lt.u32.totalorder %s1144_s30, %s1139_s10 }
  0xbd   : > { %p1142_p8 = pnand %p1140_p12, %p1381_p2  ;;  %p1148_p3 = scmp.lt.u32.totalorder %s1139_s10, %s1549_s20 }
  0xbe   : > { %p1147_p7 = por %p1146_p4, %p1145_p10 }
  0xbf   : > { %p1143_p1 = pneg %p1142_p8 }
  0xc0   : > { %p1149_p5 = por %p1148_p3, %p1147_p7 }
  0xc2   : > { %p1150_p0 = pnand %p1149_p5, %p1143_p1 }
  0xc4   : > { %1153 = shalt.err (!%p1150_p0)
}
  0xc5   : > { %s1154_s15 = scalar_lea.vmem %s385_s3, 256  ;;  %s1255_s16 = smov [#allocation13]  }
  0xc6   : > { %p1155_p9 = scmp.ne.s32.totalorder %s385_s3, %s1154_s15  ;;  %s1159_s1 = sshll.u32 %s1255_s16, 4  ;;  %s1160_s1 = int_to_ptr.vmem [resolvable:$false] %s1159_s1 }
  0xc7   : > { %s1161_s23 = scalar_lea.vmem %s1160_s1, 512  ;;  %p1162_p12 = scmp.lt.s32.totalorder %s385_s3, %s1160_s1 }
  0xc8   : > { %p1157_p6 = pnand %p1155_p9, %p1381_p2  ;;  %p1163_p8 = scmp.lt.s32.totalorder %s1161_s23, %s1154_s15 }
  0xca   : > { %p1158_p11 = pneg %p1157_p6  ;;  %p1164_p13 = por %p1163_p8, %p1162_p12 }
  0xcc   : > { %p1165_p4 = pnand %p1164_p13, %p1158_p11 }
  0xce   : > { %1168 = shalt.err (!%p1165_p4)
}
  0xcf   : > { %p1698_p10 = scmp.ne.s32.totalorder %s1681_s17, 0  ;;  %s1699_s8 = scalar_lea.sflag [#allocation12], %s1364_s18 }
  0xd0   : > { %p1700_p1 = scmp.ne.s32.totalorder %s1687_s19, 0 }
  0xd1   : > { %910 = dma.hbm_to_vmem [thread:$0]  (!%p1698_p10), %s1549_s20, 256, %s385_s3, %s1699_s8  }
  0xd2   : > { %393 = sbr.rel (%p1700_p1) target bundleno = 627 (0x273), region = 48  ;;  %s1574_s9 = sand.u32 (!%p1700_p1), 1, %s1239_s25  }
  0xd3   : > { %s1577_s29 = sshll.u32 (!%p1700_p1), %s1574_s9, 4  ;;  %s396_s10 = scalar_lea.sflag (!%p1700_p1), [#allocation3], %s1574_s9 }
  0xd4   : > { %s399_s22 = scalar_lea.vmem (!%p1700_p1), [#allocation2], %s1577_s29  ;;  %p1701_p2 = scmp.ne.s32.totalorder (!%p1700_p1), %s1678_s11, 0 }
  0xd9   : > { %1214 = dma.done.wait (%p1701_p2), %s396_s10, 256  }
  0xda   : > { %1216 = vsyncadd (%p1701_p2), %s396_s10, 4294967040  ;;  %s404_s17 = sand.u32 1, %s1318_s28   ;;  %s408_s19 = scalar_lea.vmem [#allocation5], %s1577_s29 }
  0xdb   : > { %s405_s18 = scalar_lea.sflag [#allocation6], %s404_s17 }
  0xdc   : > { %1218 = dma.done.wait (%p1701_p2), %s405_s18, 512  }
  0xdd   : > { %1220 = vsyncadd (%p1701_p2), %s405_s18, 4294966784  ;;  %s417_s20 = scalar_lea.vmem [#allocation7], %s1577_s29  ;;  %s423_s3 = scalar_lea.sflag [#allocation9], %s404_s17 }
  0xde   : > { %s426_s14 = scalar_lea.vmem [#allocation8], %s1577_s29 }
  0xdf   : > { %1222 = dma.done.wait (%p1701_p2), %s423_s3, 512  }
  0xe0   : > { %1224 = vsyncadd (%p1701_p2), %s423_s3, 4294966784  ;;  %s435_s30 = scalar_lea.vmem [#allocation10], %s1577_s29  ;;  %s441_s27 = scalar_lea.sflag [#allocation12], %s404_s17 }
  0xe1   : > { %s444_s21 = scalar_lea.vmem [#allocation11], %s1577_s29 }
  0xe2   : > { %1226 = dma.done.wait (%p1701_p2), %s441_s27, 512  }
  0xe3   : > { %1228 = vsyncadd (%p1701_p2), %s441_s27, 4294966784  ;;  %v550_v0 = vld [vmem:[%s435_s30] sm:$0xff]  ;;  %v551_v1 = vld [vmem:[%s435_s30 + $0x8] sm:$0xff]  ;;  %s453_s11 = scalar_lea.vmem [#allocation13], %s1577_s29  ;;  %vm601_vm0 = vcmask 7168   ;;  %s859_s15 = sshll.u32 %s1574_s9, 3 }
  0xe4   : > { %v533_v2 = vld [vmem:[%s426_s14] sm:$0xff]  ;;  %v557_v3 = vmul.f32 %v550_v0, %v550_v0  ;;  %v558_v4 = vmul.f32 %v551_v1, %v551_v1  ;;  %v534_v5 = vld [vmem:[%s426_s14 + $0x8] sm:$0xff]  ;;  %s513_s16 = scalar_lea.vmem [#allocation14], %s859_s15  ;;  %s861_s23 = sshll.u32 %s1318_s28, 7 }
  0xe5   : > { %v540_v6 = vmul.f32 %v533_v2, %v533_v2  ;;  %v567_v7 = vld [vmem:[%s444_s21] sm:$0xff]  ;;  %v568_v8 = vld [vmem:[%s444_s21 + $0x8] sm:$0xff]  ;;  %v541_v9 = vmul.f32 %v534_v5, %v534_v5  ;;  %s628_s1 = sshll.u32 %s513_s16, 4  ;;  %s615_s17 = scalar_lea.sflag [#allocation4], %s1574_s9  ;;  %s1610_s1 = int_to_ptr.vmem [resolvable:$true] %s628_s1 }
  0xe6   : > { %v574_v10 = vmul.f32 %v567_v7, %v567_v7  ;;  %v575_v11 = vmul.f32 %v568_v8, %v568_v8  ;;  %v514_v12 = vld [vmem:[%s399_s22] sm:$0xff]  ;;  %v515_v13 = vld [vmem:[%s399_s22 + $0x8] sm:$0xff]  ;;  %v559_v15 = vadd.f32 %v558_v4, %v557_v3  ;;  %s1615_s22 = scalar_lea.hbm %s1664_s7, %s861_s23  ;;  %s1169_s18 = scalar_lea.vmem %s1610_s1, 128 }
  0xe7   : > { %v516_v14 = vld [vmem:[%s408_s19] sm:$0xff]  ;;  %v517_v16 = vld [vmem:[%s408_s19 + $0x8] sm:$0xff]  ;;  %v542_v20 = vadd.f32 %v541_v9, %v540_v6  ;;  %p1170_p13 = scmp.ne.s32.totalorder %s1610_s1, %s1169_s18  ;;  %p1702_p7 = scmp.ne.s32.totalorder %s1679_s12, 0 }
  0xe8   : > { %v518_v17 = vadd.f32 %v516_v14, %v514_v12  ;;  %v520_v18 = vld [vmem:[%s417_s20] sm:$0xff]  ;;  %v521_v19 = vld [vmem:[%s417_s20 + $0x8] sm:$0xff]  ;;  %v519_v21 = vadd.f32 %v517_v16, %v515_v13  ;;  %560 = vadd.xlane.f32.xlu1 %v559_v15  ;;  %v576_v22 = vadd.f32 %v575_v11, %v574_v10  ;;  %s1256_s28 = smov [#allocation14]  }
  0xe9   : > { %543 = vadd.xlane.f32.xlu0 %v542_v20  ;;  %v584_v25 = vld [vmem:[%s453_s11] sm:$0xff]  ;;  %v585_v26 = vld [vmem:[%s453_s11 + $0x8] sm:$0xff]  ;;  %p1171_p3 = pnand %p1170_p13, %p1702_p7  ;;  %s1173_s19 = sshll.u32 %s1256_s28, 4  ;;  %s1174_s19 = int_to_ptr.vmem [resolvable:$false] %s1173_s19 }
  0xea   : > { %v522_v23 = vadd.f32 %v520_v18, %v518_v17  ;;  %v523_v24 = vadd.f32 %v521_v19, %v519_v21  ;;  %v591_v30 = vmul.f32 %v584_v25, %v584_v25  ;;  %v592_v31 = vmul.f32 %v585_v26, %v585_v26  ;;  %s1175_s20 = scalar_lea.vmem %s1174_s19, 256  ;;  %p1176_p0 = scmp.lt.s32.totalorder %s1610_s1, %s1174_s19 }
  0xeb   : > { %p1172_p5 = pneg %p1171_p3  ;;  %p1177_p9 = scmp.lt.s32.totalorder %s1175_s20, %s1169_s18 }
  0xec   : > { %v524_v27 = vmul.f32 0.33333334, %v522_v23  ;;  %v525_v28 = vmul.f32 0.33333334, %v523_v24  ;;  %577 = vadd.xlane.f32.xlu1 %v576_v22  ;;  %v593_v39 = vadd.f32 %v592_v31, %v591_v30 }
  0xed   : > { %p1178_p6 = por %p1177_p9, %p1176_p0 }
  0xee   : > { %v526_v29 = vmul.f32 %v524_v27, %v524_v27  ;;  %v535_v32 = vmul.f32 %v533_v2, %v524_v27  ;;  %v527_v33 = vmul.f32 %v525_v28, %v525_v28  ;;  %v536_v34 = vmul.f32 %v534_v5, %v525_v28 }
  0xef   : > { %v569_v35 = vmul.f32 %v567_v7, %v524_v27  ;;  %v570_v36 = vmul.f32 %v568_v8, %v525_v28  ;;  %v552_v41 = vmul.f32 %v550_v0, %v524_v27  ;;  %v553_v42 = vmul.f32 %v551_v1, %v525_v28  ;;  %p1179_p11 = pnand %p1178_p6, %p1172_p5 }
  0xf0   : > { %v528_v37 = vadd.f32 %v527_v33, %v526_v29  ;;  %v537_v38 = vadd.f32 %v536_v34, %v535_v32  ;;  %v586_v44 = vmul.f32 %v584_v25, %v524_v27  ;;  %v587_v45 = vmul.f32 %v585_v26, %v525_v28 }
  0xf1   : > { %v571_v40 = vadd.f32 %v570_v36, %v569_v35  ;;  %v554_v43 = vadd.f32 %v553_v42, %v552_v41 }
  0xf2   : > { %529 = vadd.xlane.f32.xlu0 %v528_v37  ;;  %538 = vadd.xlane.f32.xlu1 %v537_v38  ;;  %v588_v46 = vadd.f32 %v587_v45, %v586_v44 }
  0xf6   : > { %594 = vadd.xlane.f32.xlu0 %v593_v39  ;;  %572 = vadd.xlane.f32.xlu1 %v571_v40 }
  0xfa   : > { %555 = vadd.xlane.f32.xlu0 %v554_v43 }
  0xfe   : > { %589 = vadd.xlane.f32.xlu0 %v588_v46 }
 0x175   : > { %v561_v47 = vpop.xlane.xlu1 %560 }
 0x176   : > { %v544_v48 = vpop.xlane.xlu0 %543 }
 0x179   : > { %v578_v49 = vpop.xlane.xlu1 %577 }
 0x17a   : > { %949 = vrsqrt.f32 %v578_v49 }
 0x17b   : > { %951 = vrsqrt.f32 %v561_v47 }
 0x17c   : > { %953 = vrsqrt.f32 %v544_v48 }
 0x17f   : > { %v530_v50 = vpop.xlane.xlu0 %529  ;;  %v539_v55 = vpop.xlane.xlu1 %538 }
 0x180   : > { %955 = vrsqrt.f32 %v530_v50 }
 0x183   : > { %v595_v51 = vpop.xlane.xlu0 %594  ;;  %v573_v2 = vpop.xlane.xlu1 %572 }
 0x184   : > { %957 = vrsqrt.f32 %v595_v51  ;;  %v950_v52 = vpop.eup %949 }
 0x185   : > { %v952_v53 = vpop.eup %951  ;;  %v580_v56 = vmin.f32 %v950_v52, 1e+08 }
 0x186   : > { %v954_v54 = vpop.eup %953  ;;  %v563_v59 = vmin.f32 %v952_v53, 1e+08 }
 0x187   : > { %v556_v58 = vpop.xlane.xlu0 %555  ;;  %v546_v60 = vmin.f32 %v954_v54, 1e+08 }
 0x18a   : > { %v956_v57 = vpop.eup %955 }
 0x18b   : > { %v532_v61 = vmin.f32 %v956_v57, 1e+08  ;;  %v590_v6 = vpop.xlane.xlu0 %589 }
 0x18d   : > { %v547_v62 = vmul.f32 %v546_v60, %v532_v61  ;;  %v581_v63 = vmul.f32 %v580_v56, %v532_v61  ;;  %v564_v0 = vmul.f32 %v563_v59, %v532_v61 }
 0x18e   : > { %v958_v1 = vpop.eup %957 }
 0x18f   : > { %v597_v3 = vmin.f32 %v958_v1, 1e+08  ;;  %v548_v4 = vmul.f32 %v547_v62, %v539_v55  ;;  %v565_v5 = vmul.f32 %v564_v0, %v556_v58  ;;  %v582_v7 = vmul.f32 %v581_v63, %v573_v2 }
 0x191   : > { %v566_v8 = vadd.f32 %v565_v5, %v548_v4  ;;  %v598_v9 = vmul.f32 %v597_v3, %v532_v61 }
 0x193   : > { %v599_v10 = vmul.f32 %v598_v9, %v590_v6  ;;  %v583_v11 = vadd.f32 %v582_v7, %v566_v8 }
 0x195   : > { %v600_v12 = vadd.f32 %v599_v10, %v583_v11 }
 0x197   : > { %v602_v13 = vsel %vm601_vm0, %v600_v12, 0.0 }
 0x198   : > { %603 = vadd.xlane.f32.xlu1 %v602_v13 }
 0x225   : > { %v604_v14 = vpop.xlane.xlu1 %603 }
 0x226   : > { %v605_v15 = vrot.slane %v604_v14, 4 }
 0x228   : > { %v606_v16 = vadd.f32 %v605_v15, %v604_v14 }
 0x22a   : > { %v607_v17 = vrot.slane %v606_v16, 2 }
 0x22c   : > { %v608_v18 = vadd.f32 %v607_v17, %v606_v16 }
 0x22e   : > { %v609_v19 = vrot.slane %v608_v18, 1 }
 0x230   : > { %v610_v20 = vadd.f32 %v609_v19, %v608_v18 }
 0x232   : > { %871 = vpush %v610_v20 }
 0x263   : > { %s872_s8 = spop %871 }
 0x264   : > { %v612_v21 = vstv %s872_s8 }
 0x265   : > { %613 = vst [vmem:[%s513_s16] sm:$0xff] %v612_v21 }
 0x266   : > { %1182 = shalt.err (!%p1179_p11)
}
 0x267   : > { %s1183_s9 = scalar_lea.hbm %s1615_s22, 128  ;;  %s1187_s30 = scalar_lea.hbm %s1664_s7, 256 }
 0x268   : > { %p1184_p12 = scmp.ne.s32.totalorder %s1615_s22, %s1183_s9  ;;  %p1188_p10 = scmp.lt.u32.totalorder %s1615_s22, %s1664_s7 }
 0x269   : > { %p1189_p1 = scmp.lt.u32.totalorder %s1187_s30, %s1183_s9  ;;  %p1191_p13 = scmp.lt.u32.totalorder %s1183_s9, %s1615_s22 }
 0x26a   : > { %p1185_p8 = pnand %p1184_p12, %p1702_p7 }
 0x26b   : > { %p1190_p2 = por %p1189_p1, %p1188_p10 }
 0x26c   : > { %p1186_p4 = pneg %p1185_p8 }
 0x26d   : > { %p1192_p3 = por %p1191_p13, %p1190_p2 }
 0x26f   : > { %p1193_p5 = pnand %p1192_p3, %p1186_p4 }
 0x271   : > { %1196 = shalt.err (!%p1193_p5)
}
 0x272   : > { %887 = dma.vmem_to_hbm [thread:$0]  (%p1702_p7), %s1610_s1, 128, %s1615_s22, %s615_s17  }
 0x273 PF: > { %s1703_s11 = sld [smem:[#allocation20_spill]]  ;;  %s640_s15 = sand.u32 1, %s1235_s24  }
 0x274   : > { %p1704_p0 = scmp.ne.s32.totalorder %s1680_s13, 0  ;;  %s641_s16 = scalar_lea.sflag [#allocation4], %s640_s15 }
 0x279   : > { %p1705_p9 = scmp.ge.s32.totalorder %s1703_s11, 2 }
 0x27b   : > { %p912_p6 = pnand %p1705_p9, %p1704_p0 }
 0x27d   : > { %1230 = dma.done.wait (!%p912_p6), %s641_s16, 128  }
 0x27e   : > { %1232 = vsyncadd (!%p912_p6), %s641_s16, 4294967168  ;;  %s1706_s27 = sld [smem:[#allocation21_spill]]  ;;  %s1707_s23 = sld [smem:[#allocation22_spill]] }
 0x27f   : > { %s1708_s24 = smov %s1239_s25  ;;  %s1709_s25 = smov %s1243_s26 }
 0x284   : > { %p29_p11 = scmp.ge.s32.totalorder %s1706_s27, 4   ;;  %s1710_s26 = smov %s1707_s23 }
 0x286   :  { %31 = sbr.rel (!%p29_p11) target bundleno = 14 (0xe), region = 165 }
 0x28d   :  { %646 = vsyncpa [#allocation3], 1 }
 0x28e   :  { %648 = vsyncpa [#allocation3 + $0x1], 1 }
 0x28f   :  { %649 = vsyncpa [#allocation6], 1 }
 0x290   :  { %651 = vsyncpa [#allocation6 + $0x1], 1 }
 0x291   :  { %652 = vsyncpa [#allocation9], 1 }
 0x292   :  { %654 = vsyncpa [#allocation9 + $0x1], 1 }
 0x293   :  { %655 = vsyncpa [#allocation12], 1 }
 0x294   :  { %657 = vsyncpa [#allocation12 + $0x1], 1 }
 0x295   :  { %658 = vsyncpa [#allocation4], 1 }
 0x296   :  { %660 = vsyncpa [#allocation4 + $0x1], 1 }

</bundles_post_ra>
